<compile_context>
chip_gen: v7x
topology: tpu7x:2x2x1
jax: 0.10.0
libtpu: 0.0.40
codegen_flags: <defaults>
</compile_context>

<pallas_src>
import functools

import jax
import jax.numpy as jnp
from jax.experimental import pallas as pl
from jax.experimental.pallas import tpu as pltpu


def _pool_kernel(x_ref, avg_ref, max_ref, sum_acc, max_acc, *, hw, hw_tile, nk):
    # x_ref  : (1, C_TILE, HW_TILE)   one (batch, channel-chunk, hw-chunk) tile
    # avg_ref: (1, C_TILE, 1)         mean over H*W
    # max_ref: (1, C_TILE, 1)         max  over H*W
    # sum_acc/max_acc: (C_TILE, 1) f32 VMEM scratch (unused when nk == 1)
    inv_hw = 1.0 / float(hw)
    x = x_ref[0].astype(jnp.float32)                       # (C_TILE, HW_TILE)

    if nk == 1:
        # Whole H*W axis in one block: no accumulators, no masking needed
        # (hw_tile == hw in this case), single direct store.
        avg_ref[0] = (jnp.sum(x, axis=-1, keepdims=True) * inv_hw).astype(
            avg_ref.dtype)
        max_ref[0] = jnp.max(x, axis=-1, keepdims=True).astype(max_ref.dtype)
        return

    k = pl.program_id(2)

    @pl.when(k == 0)
    def _():
        sum_acc[...] = jnp.zeros_like(sum_acc)
        max_acc[...] = jnp.full_like(max_acc, -jnp.inf)

    if hw % hw_tile != 0:
        # Partial last chunk: mask out-of-range lanes (0 for sum, -inf for max).
        col = jax.lax.broadcasted_iota(jnp.int32, x.shape, 1)
        valid = (k * hw_tile + col) < hw
        x_sum = jnp.where(valid, x, 0.0)
        x_max = jnp.where(valid, x, -jnp.inf)
    else:
        x_sum = x
        x_max = x

    sum_acc[...] += jnp.sum(x_sum, axis=-1, keepdims=True)
    max_acc[...] = jnp.maximum(max_acc[...],
                               jnp.max(x_max, axis=-1, keepdims=True))

    @pl.when(k == nk - 1)
    def _():
        avg_ref[0] = (sum_acc[...] * inv_hw).astype(avg_ref.dtype)
        max_ref[0] = max_acc[...].astype(max_ref.dtype)


def _pick_c_tile(C):
    # Channel chunk: a multiple of 8 that divides C (extra "parallel" work for
    # megacore / the second TensorCore on v7x), or the full axis if C isn't
    # 8-aligned (full-extent block is always a legal block shape).
    for cand in (256, 128, 64, 32, 16, 8):
        if C % cand == 0:
            return cand
    return C


def _pick_hw_tile(c_tile, hw, dtype_bytes=4):
    # ~4 MiB per input block (x2 for double buffering) keeps us comfortably
    # inside scoped VMEM on all generations; 512-2048 lanes ~ HBM roofline.
    budget_lanes = (4 * 1024 * 1024) // (c_tile * dtype_bytes)
    budget_lanes = max(128, (budget_lanes // 128) * 128)
    budget_lanes = min(budget_lanes, 2048)
    if hw <= budget_lanes:
        return hw                       # full axis: always a legal block shape
    return budget_lanes                 # multiple of 128; remainder is masked


@jax.jit
def channel_attention(x, w1, w2):
    """CBAM ChannelAttention forward.

    x : (B, C, H, W)
    w1: (C//ratio, C)  -- fc1 1x1-conv weight, spatial dims squeezed
    w2: (C, C//ratio)  -- fc2 1x1-conv weight, spatial dims squeezed
    returns (B, C, 1, 1) sigmoid attention map.
    """
    B, C, H, W = x.shape
    HW = H * W
    x_flat = x.reshape(B, C, HW)        # free view; HW stays on the lane axis

    c_tile = _pick_c_tile(C)
    hw_tile = _pick_hw_tile(c_tile, HW, jnp.dtype(x.dtype).itemsize)
    nc = pl.cdiv(C, c_tile)
    nk = pl.cdiv(HW, hw_tile)

    kernel = functools.partial(_pool_kernel, hw=HW, hw_tile=hw_tile, nk=nk)

    avg_p, max_p = pl.pallas_call(
        kernel,
        out_shape=(
            jax.ShapeDtypeStruct((B, C, 1), jnp.float32),
            jax.ShapeDtypeStruct((B, C, 1), jnp.float32),
        ),
        grid_spec=pltpu.PrefetchScalarGridSpec(
            num_scalar_prefetch=0,
            grid=(B, nc, nk),
            in_specs=[
                pl.BlockSpec((1, c_tile, hw_tile), lambda b, c, k: (b, c, k)),
            ],
            out_specs=[
                pl.BlockSpec((1, c_tile, 1), lambda b, c, k: (b, c, 0)),
                pl.BlockSpec((1, c_tile, 1), lambda b, c, k: (b, c, 0)),
            ],
            scratch_shapes=[
                pltpu.VMEM((c_tile, 1), jnp.float32),   # running sum
                pltpu.VMEM((c_tile, 1), jnp.float32),   # running max
            ],
        ),
        compiler_params=pltpu.CompilerParams(
            dimension_semantics=("parallel", "parallel", "arbitrary"),
            vmem_limit_bytes=32 * 1024 * 1024,
        ),
        cost_estimate=pl.CostEstimate(
            flops=2 * B * C * HW,
            transcendentals=0,
            bytes_accessed=B * C * HW * jnp.dtype(x.dtype).itemsize
            + 2 * B * C * 4,
        ),
    )(x_flat)

    # Shared MLP (1x1 convs) + sigmoid, hoisted out of the kernel: one batched
    # GEMM with a real M dimension (2B) instead of N=1 MXU matmuls in-kernel.
    avg = avg_p[:, :, 0]                                    # (B, C)
    mx = max_p[:, :, 0]                                     # (B, C)
    p = jnp.concatenate([avg, mx], axis=0)                  # (2B, C)
    h = jnp.maximum(jnp.dot(p, w1.T, preferred_element_type=jnp.float32), 0.0)
    y = jnp.dot(h, w2.T, preferred_element_type=jnp.float32)   # (2B, C)
    att = jax.nn.sigmoid(y[:B] + y[B:])                     # (B, C)
    return att[:, :, None, None].astype(x.dtype)            # (B, C, 1, 1)


def _reference(x, w1, w2):
    """Pure-JAX reference mirroring the PyTorch forward."""
    avg = jnp.mean(x, axis=(2, 3))                 # (B, C)
    mx = jnp.max(x, axis=(2, 3))                   # (B, C)

    def mlp(p):
        h = jnp.maximum(p @ w1.T, 0.0)             # (B, Ch)
        return h @ w2.T                            # (B, C)

    out = jax.nn.sigmoid(mlp(avg) + mlp(mx))       # (B, C)
    return out[:, :, None, None]                   # (B, C, 1, 1)


if __name__ == "__main__":
    # Config 1 exercises the single-HW-chunk fast path (no accumulators);
    # config 2 exercises the multi-chunk accumulator path with a masked
    # remainder chunk (HW = 48*48 = 2304 -> chunks of 2048 + 256).
    configs = [
        (2, 32, 16, 16, 4),
        (2, 32, 48, 48, 8),
    ]
    key = jax.random.PRNGKey(0)
    for (B, C, H, W, ratio) in configs:
        Ch = C // ratio
        key, kx, k1, k2 = jax.random.split(key, 4)

        x = jax.random.normal(kx, (B, C, H, W), dtype=jnp.float32)
        # PyTorch fc1 weight is (C//ratio, C, 1, 1); fc2 is (C, C//ratio, 1, 1);
        # 1x1 spatial dims squeezed, deterministic scaled-normal init.
        w1 = jax.random.normal(k1, (Ch, C), dtype=jnp.float32) * (1.0 / jnp.sqrt(C))
        w2 = jax.random.normal(k2, (C, Ch), dtype=jnp.float32) * (1.0 / jnp.sqrt(Ch))

        y = jax.block_until_ready(channel_attention(x, w1, w2))
        y_ref = _reference(x, w1, w2)

        assert y.shape == (B, C, 1, 1), y.shape
        assert jnp.allclose(y, y_ref, atol=1e-5, rtol=1e-5), float(
            jnp.max(jnp.abs(y - y_ref))
        )

    print("KERNEL_OK")
</pallas_src>

<mosaic_0001>
module attributes {stable_mosaic.version = 11 : i64} {
  func.func @_pool_kernel(%arg0: i32, %arg1: i32, %arg2: i32, %arg3: memref<1x32x256xf32, #tpu.memory_space<vmem>>, %arg4: memref<1x32x1xf32, #tpu.memory_space<vmem>>, %arg5: memref<1x32x1xf32, #tpu.memory_space<vmem>>, %arg6: memref<32x1xf32, #tpu.memory_space<vmem>>, %arg7: memref<32x1xf32, #tpu.memory_space<vmem>>) attributes {dimension_semantics = [#tpu.dimension_semantics<parallel>, #tpu.dimension_semantics<parallel>, #tpu.dimension_semantics<arbitrary>], iteration_bounds = array<i64: 2, 1, 1>, scalar_prefetch = 0 : i64, scratch_operands = 2 : i64, tpu.core_type = #tpu.core_type<tc>, window_params = [{transform_indices = @transform_0, window_bounds = array<i64: 1, 32, 256>}, {transform_indices = @transform_1, window_bounds = array<i64: 1, 32, 1>}, {transform_indices = @transform_2, window_bounds = array<i64: 1, 32, 1>}]} {
    %c0 = arith.constant 0 : index
    %c0_0 = arith.constant 0 : index
    %c0_1 = arith.constant 0 : index
    %0 = vector.load %arg3[%c0, %c0_0, %c0_1] : memref<1x32x256xf32, #tpu.memory_space<vmem>>, vector<1x32x256xf32>
    %1 = vector.shape_cast %0 : vector<1x32x256xf32> to vector<32x256xf32>
    %cst = arith.constant dense<0.000000e+00> : vector<32xf32>
    %2 = vector.multi_reduction <add>, %1, %cst [1] : vector<32x256xf32> to vector<32xf32>
    %3 = vector.shape_cast %2 : vector<32xf32> to vector<32x1xf32>
    %cst_2 = arith.constant 3.906250e-03 : f32
    %4 = vector.broadcast %cst_2 : f32 to vector<32x1xf32>
    %5 = arith.mulf %3, %4 : vector<32x1xf32>
    %c0_3 = arith.constant 0 : index
    %c0_4 = arith.constant 0 : index
    %c0_5 = arith.constant 0 : index
    %6 = vector.load %arg4[%c0_3, %c0_4, %c0_5] : memref<1x32x1xf32, #tpu.memory_space<vmem>>, vector<1x32x1xf32>
    %7 = vector.shape_cast %6 : vector<1x32x1xf32> to vector<32x1xf32>
    %8 = vector.shape_cast %5 : vector<32x1xf32> to vector<1x32x1xf32>
    tpu.vector_store %arg4[%c0_3, %c0_4, %c0_5], %8 {strides = array<i32>} : memref<1x32x1xf32, #tpu.memory_space<vmem>>, vector<1x32x1xf32>,
    %cst_6 = arith.constant dense<0xFF800000> : vector<32xf32>
    %9 = vector.multi_reduction <maximumf>, %1, %cst_6 [1] : vector<32x256xf32> to vector<32xf32>
    %10 = vector.shape_cast %9 : vector<32xf32> to vector<32x1xf32>
    %c0_7 = arith.constant 0 : index
    %c0_8 = arith.constant 0 : index
    %c0_9 = arith.constant 0 : index
    %11 = vector.load %arg5[%c0_7, %c0_8, %c0_9] : memref<1x32x1xf32, #tpu.memory_space<vmem>>, vector<1x32x1xf32>
    %12 = vector.shape_cast %11 : vector<1x32x1xf32> to vector<32x1xf32>
    %13 = vector.shape_cast %10 : vector<32x1xf32> to vector<1x32x1xf32>
    tpu.vector_store %arg5[%c0_7, %c0_8, %c0_9], %13 {strides = array<i32>} : memref<1x32x1xf32, #tpu.memory_space<vmem>>, vector<1x32x1xf32>,
    return
  }
  func.func @transform_0(%arg0: i32, %arg1: i32, %arg2: i32) -> (i32, i32, i32) {
    %c0_i32 = arith.constant 0 : i32
    return %arg0, %arg1, %arg2 : i32, i32, i32
  }
  func.func @transform_1(%arg0: i32, %arg1: i32, %arg2: i32) -> (i32, i32, i32) {
    %c0_i32 = arith.constant 0 : i32
    %c0_i32_0 = arith.constant 0 : i32
    return %arg0, %arg1, %c0_i32 : i32, i32, i32
  }
  func.func @transform_2(%arg0: i32, %arg1: i32, %arg2: i32) -> (i32, i32, i32) {
    %c0_i32 = arith.constant 0 : i32
    %c0_i32_0 = arith.constant 0 : i32
    return %arg0, %arg1, %c0_i32 : i32, i32, i32
  }
}

</mosaic_0001>

<bundles_post_ra>
// kernel: channel_attention.1
= control target key start
LH: loop header
LB: loop body
LE: loop exit
PB: predicated region body
PF: predicated region fallthrough
CT: control target
= control target key end

     0   :  { %s503_s9 = smov 0   ;;  %s505_s10 = smov 0   ;;  %s551_s0 = inlined_call_operand.vmem [shape: f32[2,32,256], index: 0, kind: input, shape index: {}]   ;;  %s552_s1 = inlined_call_operand.vmem [shape: f32[2,32,1], index: 1, kind: output, shape index: {0}]   ;;  %s553_s2 = inlined_call_operand.vmem [shape: f32[2,32,1], index: 2, kind: output, shape index: {1}]  }
   0x1   :  { %s507_s11 = smov 0  }
   0x2 LB: > { %s32_s12 = sadd.s32 1, %s482_s10  ;;  %p428_p0 = scmp.ge.s32.totalorder %s486_s11, 1  ;;  %s486_s11 = sphi %s507_s11, %s13_s11   ;;  %s482_s10 = sphi %s505_s10, %s555_s10   ;;  %s478_s9 = sphi %s503_s9, %s554_s9  }
   0x3   : > { %p34_p1 = scmp.ge.s32.totalorder %s32_s12, 2  ;;  %p153_p2 = scmp.lt.s32.totalorder %s486_s11, 3 }
   0x5   : > { %s557_s12 = smov (%p34_p1, %s32_s12), 0  ;;  %p154_p3 = pnand %p428_p0, %p153_p2 }
   0x6   : > { %p199_p4 = scmp.lt.s32.totalorder (!%p154_p3), %s478_s9, 1  ;;  %vm257_vm0 = vcmask (!%p154_p3), 7168  }
   0x7   : > { %157 = sbr.rel (%p154_p3) target bundleno = 176 (0xb0), region = 24 }
   0xe   : > { %s559_s9 = smov (!%p199_p4, %s478_s9), 1 }
   0xf   : > { %s437_s13 = sshll.u32 %s559_s9, 6  ;;  %s438_s17 = sshll.u32 %s559_s9, 5 }
  0x10   : > { %s210_s16 = scalar_lea.vmem %s551_s0, %s437_s13  ;;  %s221_s20 = scalar_lea.vmem %s552_s1, %s438_s17 }
  0x11   : > { %v237_v0 = vld [vmem:[%s210_s16 + $0x20] sm:$0xff]  ;;  %v238_v1 = vld [vmem:[%s210_s16 + $0x28] sm:$0xff]  ;;  %v239_v5 = vld [vmem:[%s210_s16 + $0x30] sm:$0xff]  ;;  %s231_s23 = scalar_lea.vmem %s553_s2, %s438_s17 }
  0x12   : > { %v233_v2 = vld [vmem:[%s210_s16] sm:$0xff]  ;;  %v247_v3 = vadd.f32 %v238_v1, %v237_v0  ;;  %v234_v4 = vld [vmem:[%s210_s16 + $0x8] sm:$0xff]  ;;  %v240_v6 = vld [vmem:[%s210_s16 + $0x38] sm:$0xff]  ;;  %v268_v15 = vmax.f32 %v237_v0, %v238_v1 }
  0x13   : > { %v241_v7 = vadd.f32 %v234_v4, %v233_v2  ;;  %v235_v8 = vld [vmem:[%s210_s16 + $0x10] sm:$0xff]  ;;  %v236_v9 = vld [vmem:[%s210_s16 + $0x18] sm:$0xff]  ;;  %v250_v10 = vadd.f32 %v240_v6, %v239_v5  ;;  %v262_v13 = vmax.f32 %v233_v2, %v234_v4  ;;  %v271_v14 = vmax.f32 %v239_v5, %v240_v6 }
  0x14   : > { %248 = vadd.xlane.f32.xlu1 %v247_v3  ;;  %v244_v11 = vadd.f32 %v236_v9, %v235_v8  ;;  %v265_v12 = vmax.f32 %v235_v8, %v236_v9 }
  0x15   : > { %242 = vadd.xlane.f32.xlu0 %v241_v7 }
  0x18   : > { %251 = vadd.xlane.f32.xlu1 %v250_v10 }
  0x19   : > { %245 = vadd.xlane.f32.xlu0 %v244_v11 }
  0x1c   : > { %266 = vmax.xlane.f32.xlu1 %v265_v12 }
  0x1d   : > { %263 = vmax.xlane.f32.xlu0 %v262_v13 }
  0x20   : > { %272 = vmax.xlane.f32.xlu1 %v271_v14 }
  0x21   : > { %269 = vmax.xlane.f32.xlu0 %v268_v15 }
  0xa1   : > { %v249_v16 = vpop.xlane.xlu1 %248 }
  0xa2   : > { %v255_v17 = vmul.f32 0.00390625, %v249_v16  ;;  %v243_v18 = vpop.xlane.xlu0 %242 }
  0xa3   : > { %v253_v19 = vmul.f32 0.00390625, %v243_v18 }
  0xa4   : > { %260 = vst.msk [vmem:[%s221_s20 + $0x10] sm:$0xff] %vm257_vm0, %v255_v17 }
  0xa5   : > { %258 = vst.msk [vmem:[%s221_s20] sm:$0xff] %vm257_vm0, %v253_v19  ;;  %v252_v20 = vpop.xlane.xlu1 %251 }
  0xa6   : > { %v256_v21 = vmul.f32 0.00390625, %v252_v20  ;;  %v246_v22 = vpop.xlane.xlu0 %245 }
  0xa7   : > { %v254_v23 = vmul.f32 0.00390625, %v246_v22 }
  0xa8   : > { %261 = vst.msk [vmem:[%s221_s20 + $0x18] sm:$0xff] %vm257_vm0, %v256_v21 }
  0xa9   : > { %259 = vst.msk [vmem:[%s221_s20 + $0x8] sm:$0xff] %vm257_vm0, %v254_v23  ;;  %v267_v24 = vpop.xlane.xlu1 %266 }
  0xaa   : > { %275 = vst.msk [vmem:[%s231_s23 + $0x8] sm:$0xff] %vm257_vm0, %v267_v24  ;;  %v264_v25 = vpop.xlane.xlu0 %263 }
  0xab   : > { %274 = vst.msk [vmem:[%s231_s23] sm:$0xff] %vm257_vm0, %v264_v25 }
  0xad   : > { %v273_v26 = vpop.xlane.xlu1 %272 }
  0xae   : > { %277 = vst.msk [vmem:[%s231_s23 + $0x18] sm:$0xff] %vm257_vm0, %v273_v26  ;;  %v270_v27 = vpop.xlane.xlu0 %269 }
  0xaf   : > { %276 = vst.msk [vmem:[%s231_s23 + $0x10] sm:$0xff] %vm257_vm0, %v270_v27 }
  0xb0 PF: > { %s13_s11 = sadd.s32 1, %s486_s11   ;;  %s554_s9 = smov %s482_s10 }
  0xb1   : > { %p10_p5 = scmp.ge.s32.totalorder %s13_s11, 4   ;;  %s555_s10 = smov %s557_s12 }
  0xb3   :  { %12 = sbr.rel (!%p10_p5) target bundleno = 2 (0x2), region = 66 }

</bundles_post_ra>
